<compile_context>
chip_gen: v5e
topology: v5e:2x2
jax: 0.10.0
libtpu: 0.0.40
codegen_flags: <defaults>
</compile_context>

<pallas_src>
import functools
import math

import jax
import jax.numpy as jnp
from jax.experimental import pallas as pl
from jax.experimental.pallas import tpu as pltpu

_LANE = 128


def _round_up(x, m):
    return ((x + m - 1) // m) * m


def _vmem_capacity_bytes():
    """Physical per-core VMEM; conservative v7x fallback if the query fails."""
    try:
        return int(pltpu.get_tpu_info().vmem_capacity_bytes)
    except Exception:
        return 64 << 20


def _plan_tiling(n, f_pad, num_hops):
    """Pick (n_pad, col_tile, vmem_estimate_bytes) for the fused kernel.

    Generation-aware: v5e/v6e (128 MiB) get ~112 MiB to work with, v7x
    (64 MiB) is capped at ~54 MiB so Mosaic internal scratch still fits.
    All buffers are conservatively counted double-buffered.
    """
    cap_total = _vmem_capacity_bytes()
    cap = cap_total - max(10 << 20, cap_total // 8)

    def fixed_bytes(n_pad):
        scratch = n_pad * f_pad * (2 + 4 + 4)            # bf16 H + f32 hop/proj acc
        xbuf = 2 * n_pad * f_pad * 2                     # bf16 x (double buffered)
        obuf = 2 * n_pad * f_pad * 4                     # f32 out (double buffered)
        wbuf = 2 * (num_hops + 1) * f_pad * f_pad * 2    # bf16 W (double buffered)
        bbuf = 2 * f_pad * 4
        return scratch + xbuf + obuf + wbuf + bbuf

    n128 = _round_up(max(n, 1), _LANE)

    # Case A: the whole padded P is VMEM-resident -> DMA'd from HBM once.
    full = fixed_bytes(n128) + 2 * n128 * n128 * 2
    if full <= cap:
        return n128, n128, full

    # Case B: tile P's reduction (column) axis.  Prefer deep tiles (>=256) so
    # each h_dst read-modify-write amortizes over a deep MXU contraction; pad
    # n up to the tile so divisibility never silently collapses to 128.
    max_tile = min(n128, 512)
    for tile in range(max_tile, _LANE - 1, -_LANE):
        n_pad = _round_up(n, tile)
        est = fixed_bytes(n_pad) + 2 * n_pad * tile * 2
        if est <= cap:
            return n_pad, tile, est

    # TODO(synk): add P row tiling (second-level pipeline) to scale further.
    raise ValueError(
        f"graph with {n} nodes does not fit the single-row-block kernel "
        f"within the {cap >> 20} MiB VMEM budget; row tiling not implemented")


def _gnn_backbone_kernel(p_ref, x_ref, w_ref, b_ref, o_ref,
                         h_bf, h_dst, acc, *, num_hops, col_tile):
    """Fused multi-layer TAGConv + ReLU.

    p_ref : (N_pad, col_tile)        bf16  column tile of the propagation matrix
    x_ref : (N_pad, F_pad)           bf16  padded input features (loaded once)
    w_ref : (K+1, F_pad, F_pad)      bf16  this layer's stacked hop weights
    b_ref : (1, F_pad)               f32   this layer's bias
    o_ref : (N_pad, F_pad)           f32   final layer's activations
    h_bf  : (N_pad, F_pad) bf16      persistent hop-source activations (MXU feed)
    h_dst : (N_pad, F_pad) f32       hop accumulator across P column tiles
    acc   : (N_pad, F_pad) f32       per-layer projection accumulator
    """
    l = pl.program_id(0)
    k = pl.program_id(1)          # hop index: this phase produces P^(k+1) x
    kt = pl.program_id(2)         # reduction (column) tile of P
    n_kt = pl.num_programs(2)
    num_layers = pl.num_programs(0)

    layer_start = jnp.logical_and(k == 0, kt == 0)
    hop_done = kt == n_kt - 1
    layer_done = jnp.logical_and(hop_done, k == num_hops - 1)

    # Seed the bf16 activation scratch with the padded node features once.
    @pl.when(jnp.logical_and(layer_start, l == 0))
    def _():
        h_bf[...] = x_ref[...]

    # Hop-0 projection: acc = H_0 @ W_0 (bf16 x bf16 -> f32 on the MXU).
    @pl.when(layer_start)
    def _():
        acc[...] = jnp.dot(h_bf[...], w_ref[0],
                           preferred_element_type=jnp.float32)

    # One reduction tile of hop k:  h_dst (+)= P[:, tile kt] @ H_k[tile kt, :].
    # Both MXU operands come straight from bf16 VMEM (no per-tile cast).
    col0 = pl.multiple_of(kt * col_tile, col_tile)
    partial = jnp.dot(p_ref[...], h_bf[pl.ds(col0, col_tile), :],
                      preferred_element_type=jnp.float32)

    @pl.when(kt == 0)
    def _():
        h_dst[...] = partial

    @pl.when(kt > 0)
    def _():
        h_dst[...] += partial

    # Hop epilogue (once per hop): fold H_{k+1} into the projection
    # accumulator and stage its bf16 copy as the next hop's MXU operand.
    @pl.when(hop_done)
    def _():
        h_new = h_dst[...].astype(jnp.bfloat16)
        acc[...] += jnp.dot(h_new, w_ref[k + 1],
                            preferred_element_type=jnp.float32)
        h_bf[...] = h_new

    # Layer epilogue (once per layer): bias + ReLU, feed the next layer.
    @pl.when(layer_done)
    def _():
        out = jnp.maximum(acc[...] + b_ref[...], 0.0)
        h_bf[...] = out.astype(jnp.bfloat16)

    # Only the final layer's activations ever leave VMEM.
    @pl.when(jnp.logical_and(layer_done, l == num_layers - 1))
    def _():
        o_ref[...] = jnp.maximum(acc[...] + b_ref[...], 0.0)


def _gnn_backbone_pallas(p_pad, x_pad, w_all, b_all, *, num_layers, num_hops,
                         n_pad, f_pad, col_tile, vmem_est):
    n_kt = n_pad // col_tile
    grid = (num_layers, num_hops, n_kt)

    flops = num_layers * (2 * num_hops * n_pad * n_pad * f_pad
                          + 2 * (num_hops + 1) * n_pad * f_pad * f_pad)
    # P is re-streamed every (layer, hop) unless it is fully VMEM-resident.
    p_passes = 1 if col_tile == n_pad else num_layers * num_hops
    bytes_accessed = (p_passes * n_pad * n_pad * 2
                      + x_pad.size * 2
                      + w_all.size * 2
                      + b_all.size * 4
                      + n_pad * f_pad * 4)

    vmem_limit = int(min(_vmem_capacity_bytes() - (8 << 20),
                         max(32 << 20, vmem_est + (8 << 20))))

    kernel = functools.partial(_gnn_backbone_kernel, num_hops=num_hops,
                               col_tile=col_tile)

    return pl.pallas_call(
        kernel,
        out_shape=jax.ShapeDtypeStruct((n_pad, f_pad), jnp.float32),
        grid_spec=pltpu.PrefetchScalarGridSpec(
            num_scalar_prefetch=0,
            grid=grid,
            in_specs=[
                # P column tile; with col_tile == n_pad the block index is
                # constant -> DMA'd from HBM exactly once for the whole stack.
                pl.BlockSpec((n_pad, col_tile), lambda l, k, kt: (0, kt)),
                # input features (bf16), loaded once
                pl.BlockSpec((n_pad, f_pad), lambda l, k, kt: (0, 0)),
                # per-layer stacked hop weights (K+1, F, F) bf16; layer dim
                # squeezed out of the kernel view
                pl.BlockSpec((None, num_hops + 1, f_pad, f_pad),
                             lambda l, k, kt: (l, 0, 0, 0)),
                # per-layer bias (f32)
                pl.BlockSpec((None, 1, f_pad), lambda l, k, kt: (l, 0, 0)),
            ],
            out_specs=pl.BlockSpec((n_pad, f_pad), lambda l, k, kt: (0, 0)),
            scratch_shapes=[
                pltpu.VMEM((n_pad, f_pad), jnp.bfloat16),   # H_k (MXU feed)
                pltpu.VMEM((n_pad, f_pad), jnp.float32),    # hop accumulator
                pltpu.VMEM((n_pad, f_pad), jnp.float32),    # projection acc
            ],
        ),
        compiler_params=pltpu.CompilerParams(
            dimension_semantics=("arbitrary", "arbitrary", "arbitrary"),
            vmem_limit_bytes=vmem_limit,
        ),
        cost_estimate=pl.CostEstimate(
            flops=int(flops), transcendentals=0,
            bytes_accessed=int(bytes_accessed)),
    )(p_pad, x_pad, w_all, b_all)


def gcn_norm_dense(a):
    """Dense equivalent of PyG gcn_norm (add_self_loops=False, symmetric)."""
    deg = a.sum(axis=0)  # target-side (column) degree
    dis = jnp.where(deg > 0, 1.0 / jnp.sqrt(deg), 0.0)
    # edge (j -> i) gets weight dis[j] * A[j, i] * dis[i]; aggregation at i
    # means the per-hop operator is P = (dis[:, None] * A * dis[None, :]).T
    return (dis[:, None] * a * dis[None, :]).T


def init_gnn_backbone_params(key, input_dim, num_layers, num_hops, latent_size):
    """Deterministic synthetic init matching the module's parameter shapes."""
    dims = [input_dim] + [latent_size] * num_layers
    params = []
    for layer in range(num_layers):
        key, kw, kb = jax.random.split(key, 3)
        fan_in = dims[layer]
        bound = 1.0 / math.sqrt(fan_in)
        w = jax.random.uniform(
            kw, (num_hops + 1, dims[layer], dims[layer + 1]),
            dtype=jnp.float32, minval=-bound, maxval=bound)
        b = jax.random.uniform(
            kb, (1, dims[layer + 1]),
            dtype=jnp.float32, minval=-bound, maxval=bound)
        params.append((w, b))
    return params


@jax.jit
def gnn_backbone_forward(x, adj_dense, params):
    """x: (N, input_dim); adj_dense: (N, N) dense view of sparse edge_weight;
    params: list of (W (K+1, Fin, Fout), b (1, Fout)) per layer."""
    n, input_dim = x.shape
    num_layers = len(params)
    num_hops = params[0][0].shape[0] - 1
    latent_size = params[-1][0].shape[-1]
    assert num_hops >= 1 and num_layers >= 1

    f_pad = _round_up(max(input_dim, latent_size, 1), _LANE)
    n_pad, col_tile, vmem_est = _plan_tiling(n, f_pad, num_hops)

    # Normalize in f32, then cast the MXU operands (P, x, W) to bf16; all
    # accumulation inside the kernel is f32.
    p = gcn_norm_dense(adj_dense).astype(jnp.bfloat16)
    p_pad = jnp.zeros((n_pad, n_pad), jnp.bfloat16).at[:n, :n].set(p)
    x_pad = jnp.zeros((n_pad, f_pad), jnp.bfloat16).at[:n, :input_dim].set(
        x.astype(jnp.bfloat16))

    w_blocks, b_blocks = [], []
    for (w, b) in params:
        kp1, fin, fout = w.shape
        assert kp1 == num_hops + 1
        wp = jnp.zeros((kp1, f_pad, f_pad), jnp.bfloat16).at[:, :fin, :fout].set(
            w.astype(jnp.bfloat16))
        bp = jnp.zeros((1, f_pad), jnp.float32).at[:, :fout].set(b)
        w_blocks.append(wp)
        b_blocks.append(bp)
    w_all = jnp.stack(w_blocks)            # (L, K+1, F_pad, F_pad) bf16
    b_all = jnp.stack(b_blocks)            # (L, 1, F_pad) f32

    out_pad = _gnn_backbone_pallas(
        p_pad, x_pad, w_all, b_all,
        num_layers=num_layers, num_hops=num_hops,
        n_pad=n_pad, f_pad=f_pad, col_tile=col_tile, vmem_est=vmem_est)
    return out_pad[:n, :latent_size]


def _reference_forward(x, adj_dense, params):
    """Pure-jnp f32 reference for correctness checking."""
    p = gcn_norm_dense(adj_dense)
    for w, b in params:
        k_hops = w.shape[0] - 1
        h = x
        out = h @ w[0]
        for k in range(1, k_hops + 1):
            h = p @ h
            out = out + h @ w[k]
        x = jnp.maximum(out + b, 0.0)
    return x


if __name__ == "__main__":
    # Hyperparameters (small, consistent with the module's constructor).
    N = 16            # number of graph nodes
    INPUT_DIM = 8
    NUM_LAYERS = 2
    NUM_HOPS = 3      # K
    LATENT_SIZE = 32

    key = jax.random.PRNGKey(0)
    k_x, k_mask, k_val, k_params = jax.random.split(key, 4)

    # Node features.
    x = jax.random.normal(k_x, (N, INPUT_DIM), dtype=jnp.float32)

    # Sparse weighted adjacency (edge_weight in the PyTorch forward),
    # represented here densely: A[src, dst] = weight.
    mask = (jax.random.uniform(k_mask, (N, N)) < 0.4).astype(jnp.float32)
    vals = jax.random.uniform(k_val, (N, N), minval=0.1, maxval=1.0)
    adj_dense = mask * vals

    params = init_gnn_backbone_params(
        k_params, INPUT_DIM, NUM_LAYERS, NUM_HOPS, LATENT_SIZE)

    out = gnn_backbone_forward(x, adj_dense, params)
    out = jax.block_until_ready(out)

    ref = _reference_forward(x, adj_dense, params)
    assert out.shape == (N, LATENT_SIZE), out.shape
    # The whole MXU path (P, x, W, inter-hop activations) is bf16 inside the
    # kernel, so the tolerance vs the f32 reference is loosened accordingly.
    max_err = float(jnp.max(jnp.abs(out - ref)))
    assert jnp.allclose(out, ref, atol=1e-1, rtol=1e-1), max_err

    print("KERNEL_OK")
</pallas_src>

<mosaic_0001>
module attributes {stable_mosaic.version = 11 : i64} {
  func.func @_gnn_backbone_kernel(%arg0: i32, %arg1: i32, %arg2: i32, %arg3: memref<128x128xbf16, #tpu.memory_space<vmem>>, %arg4: memref<128x128xbf16, #tpu.memory_space<vmem>>, %arg5: memref<1x4x128x128xbf16, #tpu.memory_space<vmem>>, %arg6: memref<1x1x128xf32, #tpu.memory_space<vmem>>, %arg7: memref<128x128xf32, #tpu.memory_space<vmem>>, %arg8: memref<128x128xbf16, #tpu.memory_space<vmem>>, %arg9: memref<128x128xf32, #tpu.memory_space<vmem>>, %arg10: memref<128x128xf32, #tpu.memory_space<vmem>>) attributes {dimension_semantics = [#tpu.dimension_semantics<arbitrary>, #tpu.dimension_semantics<arbitrary>, #tpu.dimension_semantics<arbitrary>], iteration_bounds = array<i64: 2, 3, 1>, scalar_prefetch = 0 : i64, scratch_operands = 3 : i64, tpu.core_type = #tpu.core_type<tc>, window_params = [{transform_indices = @transform_0, window_bounds = array<i64: 128, 128>}, {pipeline_mode = #tpu.pipeline_mode<synchronous>, transform_indices = @transform_1, window_bounds = array<i64: 128, 128>}, {transform_indices = @transform_2, window_bounds = array<i64: 1, 4, 128, 128>}, {transform_indices = @transform_3, window_bounds = array<i64: 1, 1, 128>}, {pipeline_mode = #tpu.pipeline_mode<synchronous>, transform_indices = @transform_4, window_bounds = array<i64: 128, 128>}]} {
    %c0_i32 = arith.constant 0 : i32
    %0 = arith.cmpi eq, %arg1, %c0_i32 : i32
    %c0_i32_0 = arith.constant 0 : i32
    %1 = arith.cmpi eq, %arg2, %c0_i32_0 : i32
    %2 = arith.andi %0, %1 : i1
    %c0_i32_1 = arith.constant 0 : i32
    %3 = arith.cmpi eq, %arg2, %c0_i32_1 : i32
    %c2_i32 = arith.constant 2 : i32
    %4 = arith.cmpi eq, %arg1, %c2_i32 : i32
    %5 = arith.andi %3, %4 : i1
    %c0_i32_2 = arith.constant 0 : i32
    %6 = arith.cmpi eq, %arg0, %c0_i32_2 : i32
    %7 = arith.andi %2, %6 : i1
    %8 = arith.extui %7 : i1 to i32
    %c0_i32_3 = arith.constant 0 : i32
    %9 = arith.cmpi ne, %8, %c0_i32_3 : i32
    scf.if %9 {
      %c0_14 = arith.constant 0 : index
      %c0_15 = arith.constant 0 : index
      %32 = vector.load %arg4[%c0_14, %c0_15] : memref<128x128xbf16, #tpu.memory_space<vmem>>, vector<128x128xbf16>
      %c0_16 = arith.constant 0 : index
      %c0_17 = arith.constant 0 : index
      %33 = vector.load %arg8[%c0_16, %c0_17] : memref<128x128xbf16, #tpu.memory_space<vmem>>, vector<128x128xbf16>
      tpu.vector_store %arg8[%c0_16, %c0_17], %32 {strides = array<i32>} : memref<128x128xbf16, #tpu.memory_space<vmem>>, vector<128x128xbf16>,
    } else {
    }
    %10 = arith.extui %2 : i1 to i32
    %c0_i32_4 = arith.constant 0 : i32
    %11 = arith.cmpi ne, %10, %c0_i32_4 : i32
    scf.if %11 {
      %c0_14 = arith.constant 0 : index
      %c0_15 = arith.constant 0 : index
      %32 = vector.load %arg8[%c0_14, %c0_15] : memref<128x128xbf16, #tpu.memory_space<vmem>>, vector<128x128xbf16>
      %c0_16 = arith.constant 0 : index
      %c0_17 = arith.constant 0 : index
      %c0_18 = arith.constant 0 : index
      %c0_19 = arith.constant 0 : index
      %33 = vector.load %arg5[%c0_16, %c0_17, %c0_18, %c0_19] : memref<1x4x128x128xbf16, #tpu.memory_space<vmem>>, vector<1x1x128x128xbf16>
      %34 = vector.shape_cast %33 : vector<1x1x128x128xbf16> to vector<128x128xbf16>
      %cst_20 = arith.constant dense<0.000000e+00> : vector<128x128xf32>
      %35 = tpu.matmul %32, %34, %cst_20 {dimension_numbers = #tpu.dot_dimension_numbers<[1], [0], [0], [1], [0, 0, 1, 1], [], []>} : vector<128x128xbf16>, vector<128x128xbf16>, vector<128x128xf32> -> vector<128x128xf32>
      %c0_21 = arith.constant 0 : index
      %c0_22 = arith.constant 0 : index
      %36 = vector.load %arg10[%c0_21, %c0_22] : memref<128x128xf32, #tpu.memory_space<vmem>>, vector<128x128xf32>
      tpu.vector_store %arg10[%c0_21, %c0_22], %35 {strides = array<i32>} : memref<128x128xf32, #tpu.memory_space<vmem>>, vector<128x128xf32>,
    } else {
    }
    %c128_i32 = arith.constant 128 : i32
    %12 = arith.muli %arg2, %c128_i32 : i32
    %13 = tpu.assume_multiple %12, 128 : i32
    %c0 = arith.constant 0 : index
    %c0_5 = arith.constant 0 : index
    %14 = vector.load %arg3[%c0, %c0_5] : memref<128x128xbf16, #tpu.memory_space<vmem>>, vector<128x128xbf16>
    %15 = arith.index_cast %13 : i32 to index
    %c0_6 = arith.constant 0 : index
    %16 = vector.load %arg8[%15, %c0_6] : memref<128x128xbf16, #tpu.memory_space<vmem>>, vector<128x128xbf16>
    %cst = arith.constant dense<0.000000e+00> : vector<128x128xf32>
    %17 = tpu.matmul %14, %16, %cst {dimension_numbers = #tpu.dot_dimension_numbers<[1], [0], [0], [1], [0, 0, 1, 1], [], []>} : vector<128x128xbf16>, vector<128x128xbf16>, vector<128x128xf32> -> vector<128x128xf32>
    %c0_i32_7 = arith.constant 0 : i32
    %18 = arith.cmpi eq, %arg2, %c0_i32_7 : i32
    %19 = arith.extui %18 : i1 to i32
    %c0_i32_8 = arith.constant 0 : i32
    %20 = arith.cmpi ne, %19, %c0_i32_8 : i32
    scf.if %20 {
      %c0_14 = arith.constant 0 : index
      %c0_15 = arith.constant 0 : index
      %32 = vector.load %arg9[%c0_14, %c0_15] : memref<128x128xf32, #tpu.memory_space<vmem>>, vector<128x128xf32>
      tpu.vector_store %arg9[%c0_14, %c0_15], %17 {strides = array<i32>} : memref<128x128xf32, #tpu.memory_space<vmem>>, vector<128x128xf32>,
    } else {
    }
    %c0_i32_9 = arith.constant 0 : i32
    %21 = arith.cmpi sgt, %arg2, %c0_i32_9 : i32
    %22 = arith.extui %21 : i1 to i32
    %c0_i32_10 = arith.constant 0 : i32
    %23 = arith.cmpi ne, %22, %c0_i32_10 : i32
    scf.if %23 {
      %c0_14 = arith.constant 0 : index
      %c0_15 = arith.constant 0 : index
      %32 = vector.load %arg9[%c0_14, %c0_15] : memref<128x128xf32, #tpu.memory_space<vmem>>, vector<128x128xf32>
      %33 = arith.addf %32, %17 : vector<128x128xf32>
      %c0_16 = arith.constant 0 : index
      %c0_17 = arith.constant 0 : index
      %34 = vector.load %arg9[%c0_16, %c0_17] : memref<128x128xf32, #tpu.memory_space<vmem>>, vector<128x128xf32>
      tpu.vector_store %arg9[%c0_16, %c0_17], %33 {strides = array<i32>} : memref<128x128xf32, #tpu.memory_space<vmem>>, vector<128x128xf32>,
    } else {
    }
    %24 = arith.extui %3 : i1 to i32
    %c0_i32_11 = arith.constant 0 : i32
    %25 = arith.cmpi ne, %24, %c0_i32_11 : i32
    scf.if %25 {
      %c0_14 = arith.constant 0 : index
      %c0_15 = arith.constant 0 : index
      %32 = vector.load %arg9[%c0_14, %c0_15] : memref<128x128xf32, #tpu.memory_space<vmem>>, vector<128x128xf32>
      %33 = arith.truncf %32 : vector<128x128xf32> to vector<128x128xbf16>
      %c0_16 = arith.constant 0 : index
      %c0_17 = arith.constant 0 : index
      %34 = vector.load %arg10[%c0_16, %c0_17] : memref<128x128xf32, #tpu.memory_space<vmem>>, vector<128x128xf32>
      %c1_i32_18 = arith.constant 1 : i32
      %35 = arith.addi %arg1, %c1_i32_18 : i32
      %c0_19 = arith.constant 0 : index
      %36 = arith.index_cast %35 : i32 to index
      %c0_20 = arith.constant 0 : index
      %c0_21 = arith.constant 0 : index
      %37 = vector.load %arg5[%c0_19, %36, %c0_20, %c0_21] : memref<1x4x128x128xbf16, #tpu.memory_space<vmem>>, vector<1x1x128x128xbf16>
      %38 = vector.shape_cast %37 : vector<1x1x128x128xbf16> to vector<128x128xbf16>
      %cst_22 = arith.constant dense<0.000000e+00> : vector<128x128xf32>
      %39 = tpu.matmul %33, %38, %cst_22 {dimension_numbers = #tpu.dot_dimension_numbers<[1], [0], [0], [1], [0, 0, 1, 1], [], []>} : vector<128x128xbf16>, vector<128x128xbf16>, vector<128x128xf32> -> vector<128x128xf32>
      %40 = arith.addf %34, %39 : vector<128x128xf32>
      %c0_23 = arith.constant 0 : index
      %c0_24 = arith.constant 0 : index
      %41 = vector.load %arg10[%c0_23, %c0_24] : memref<128x128xf32, #tpu.memory_space<vmem>>, vector<128x128xf32>
      tpu.vector_store %arg10[%c0_23, %c0_24], %40 {strides = array<i32>} : memref<128x128xf32, #tpu.memory_space<vmem>>, vector<128x128xf32>,
      %c0_25 = arith.constant 0 : index
      %c0_26 = arith.constant 0 : index
      %42 = vector.load %arg8[%c0_25, %c0_26] : memref<128x128xbf16, #tpu.memory_space<vmem>>, vector<128x128xbf16>
      tpu.vector_store %arg8[%c0_25, %c0_26], %33 {strides = array<i32>} : memref<128x128xbf16, #tpu.memory_space<vmem>>, vector<128x128xbf16>,
    } else {
    }
    %26 = arith.extui %5 : i1 to i32
    %c0_i32_12 = arith.constant 0 : i32
    %27 = arith.cmpi ne, %26, %c0_i32_12 : i32
    scf.if %27 {
      %c0_14 = arith.constant 0 : index
      %c0_15 = arith.constant 0 : index
      %32 = vector.load %arg10[%c0_14, %c0_15] : memref<128x128xf32, #tpu.memory_space<vmem>>, vector<128x128xf32>
      %c0_16 = arith.constant 0 : index
      %c0_17 = arith.constant 0 : index
      %c0_18 = arith.constant 0 : index
      %33 = vector.load %arg6[%c0_16, %c0_17, %c0_18] : memref<1x1x128xf32, #tpu.memory_space<vmem>>, vector<1x1x128xf32>
      %34 = vector.shape_cast %33 : vector<1x1x128xf32> to vector<1x128xf32>
      %35 = vector.broadcast %34 : vector<1x128xf32> to vector<128x128xf32>
      %36 = arith.addf %32, %35 : vector<128x128xf32>
      %cst_19 = arith.constant 0.000000e+00 : f32
      %37 = vector.broadcast %cst_19 : f32 to vector<128x128xf32>
      %38 = arith.maximumf %36, %37 : vector<128x128xf32>
      %39 = arith.truncf %38 : vector<128x128xf32> to vector<128x128xbf16>
      %c0_20 = arith.constant 0 : index
      %c0_21 = arith.constant 0 : index
      %40 = vector.load %arg8[%c0_20, %c0_21] : memref<128x128xbf16, #tpu.memory_space<vmem>>, vector<128x128xbf16>
      tpu.vector_store %arg8[%c0_20, %c0_21], %39 {strides = array<i32>} : memref<128x128xbf16, #tpu.memory_space<vmem>>, vector<128x128xbf16>,
    } else {
    }
    %c1_i32 = arith.constant 1 : i32
    %28 = arith.cmpi eq, %arg0, %c1_i32 : i32
    %29 = arith.andi %5, %28 : i1
    %30 = arith.extui %29 : i1 to i32
    %c0_i32_13 = arith.constant 0 : i32
    %31 = arith.cmpi ne, %30, %c0_i32_13 : i32
    scf.if %31 {
      %c0_14 = arith.constant 0 : index
      %c0_15 = arith.constant 0 : index
      %32 = vector.load %arg10[%c0_14, %c0_15] : memref<128x128xf32, #tpu.memory_space<vmem>>, vector<128x128xf32>
      %c0_16 = arith.constant 0 : index
      %c0_17 = arith.constant 0 : index
      %c0_18 = arith.constant 0 : index
      %33 = vector.load %arg6[%c0_16, %c0_17, %c0_18] : memref<1x1x128xf32, #tpu.memory_space<vmem>>, vector<1x1x128xf32>
      %34 = vector.shape_cast %33 : vector<1x1x128xf32> to vector<1x128xf32>
      %35 = vector.broadcast %34 : vector<1x128xf32> to vector<128x128xf32>
      %36 = arith.addf %32, %35 : vector<128x128xf32>
      %cst_19 = arith.constant 0.000000e+00 : f32
      %37 = vector.broadcast %cst_19 : f32 to vector<128x128xf32>
      %38 = arith.maximumf %36, %37 : vector<128x128xf32>
      %c0_20 = arith.constant 0 : index
      %c0_21 = arith.constant 0 : index
      %39 = vector.load %arg7[%c0_20, %c0_21] : memref<128x128xf32, #tpu.memory_space<vmem>>, vector<128x128xf32>
      tpu.vector_store %arg7[%c0_20, %c0_21], %38 {strides = array<i32>} : memref<128x128xf32, #tpu.memory_space<vmem>>, vector<128x128xf32>,
    } else {
    }
    return
  }
  func.func @transform_0(%arg0: i32, %arg1: i32, %arg2: i32) -> (i32, i32) {
    %c0_i32 = arith.constant 0 : i32
    %c0_i32_0 = arith.constant 0 : i32
    return %c0_i32, %arg2 : i32, i32
  }
  func.func @transform_1(%arg0: i32, %arg1: i32, %arg2: i32) -> (i32, i32) {
    %c0_i32 = arith.constant 0 : i32
    %c0_i32_0 = arith.constant 0 : i32
    %c0_i32_1 = arith.constant 0 : i32
    return %c0_i32, %c0_i32_0 : i32, i32
  }
  func.func @transform_2(%arg0: i32, %arg1: i32, %arg2: i32) -> (i32, i32, i32, i32) {
    %c0_i32 = arith.constant 0 : i32
    %c0_i32_0 = arith.constant 0 : i32
    %c0_i32_1 = arith.constant 0 : i32
    %c0_i32_2 = arith.constant 0 : i32
    return %arg0, %c0_i32, %c0_i32_0, %c0_i32_1 : i32, i32, i32, i32
  }
  func.func @transform_3(%arg0: i32, %arg1: i32, %arg2: i32) -> (i32, i32, i32) {
    %c0_i32 = arith.constant 0 : i32
    %c0_i32_0 = arith.constant 0 : i32
    %c0_i32_1 = arith.constant 0 : i32
    return %arg0, %c0_i32, %c0_i32_0 : i32, i32, i32
  }
  func.func @transform_4(%arg0: i32, %arg1: i32, %arg2: i32) -> (i32, i32) {
    %c0_i32 = arith.constant 0 : i32
    %c0_i32_0 = arith.constant 0 : i32
    %c0_i32_1 = arith.constant 0 : i32
    return %c0_i32, %c0_i32_0 : i32, i32
  }
}

</mosaic_0001>

<bundles_post_ra>
// kernel: gnn_backbone_forward.1
= control target key start
LH: loop header
LB: loop body
LE: loop exit
PB: predicated region body
PF: predicated region fallthrough
CT: control target
= control target key end

     0   :  { %s1692_s15 = smov 0   ;;  %s1694_s16 = smov 0   ;;  %s1883_s0 = inlined_call_operand.vmem [shape: bf16[128,128], index: 0, kind: input, shape index: {}]   ;;  %s1884_s1 = inlined_call_operand.vmem [shape: bf16[128,128], index: 1, kind: input, shape index: {}]   ;;  %s1885_s2 = inlined_call_operand.vmem [shape: bf16[2,4,128,128], index: 2, kind: input, shape index: {}]   ;;  %s1886_s3 = inlined_call_operand.vmem [shape: f32[2,1,128], index: 3, kind: input, shape index: {}]   ;;  %s1887_s4 = inlined_call_operand.vmem [shape: f32[128,128], index: 4, kind: output, shape index: {}]  }
   0x1   :  { %s1696_s17 = smov 0   ;;  %s1698_s18 = smov 0  }
   0x2   :  { %s1700_s19 = smov 0  }
   0x3 LB: > { %s29_s20 = sadd.s32 1, %s1657_s17  ;;  %s33_s21 = sadd.s32 1, %s1661_s18  ;;  %s1665_s19 = sphi %s1700_s19, %s14_s19   ;;  %s1661_s18 = sphi %s1698_s18, %s1891_s18   ;;  %s1657_s17 = sphi %s1696_s17, %s1890_s17   ;;  %s1653_s16 = sphi %s1694_s16, %s1889_s16   ;;  %s1649_s15 = sphi %s1692_s15, %s1888_s15  }
   0x4   : > { %p31_p0 = scmp.ge.s32.totalorder %s29_s20, 3  ;;  %p1224_p1 = scmp.ge.s32.totalorder %s1665_s19, 1 }
   0x5   : > { %p193_p2 = scmp.lt.s32.totalorder %s1665_s19, 7 }
   0x6   : > { %s1893_s20 = smov (%p31_p0, %s29_s20), 0  ;;  %s1895_s21 = smov (!%p31_p0, %s33_s21), %s1661_s18 }
   0x7   : > { %p194_p3 = pnand %p1224_p1, %p193_p2  ;;  %p35_p4 = scmp.ge.s32.totalorder %s1895_s21, 2 }
   0x8   : > { %p225_p5 = scmp.lt.s32.totalorder (!%p194_p3), %s1653_s16, 1  ;;  %p233_p6 = scmp.eq.s32.totalorder (!%p194_p3), %s1649_s15, 0 }
   0x9   : > { %s1897_s21 = smov (%p35_p4, %s1895_s21), 0  ;;  %197 = sbr.rel (%p194_p3) target bundleno = 634 (0x27a), region = 36 }
   0xa   : > { %p237_p7 = scmp.eq.s32.totalorder (!%p194_p3), %s1649_s15, 2  ;;  %p240_p8 = scmp.eq.s32.totalorder (!%p194_p3), %s1653_s16, 0 }
   0xc   : > { %p241_p9 = pnand (!%p194_p3), %p240_p8, %p233_p6 }
   0xe   : > { %s226_s22 = scalar_select %p225_p5, %s1653_s16, 1 }
   0xf   : > { %244 = sbr.rel (%p241_p9) target bundleno = 29 (0x1d), region = 40 }
  0x10   : > { %s1408_s23 = sshll.u32 %s226_s22, 8  ;;  %s1736_s26 = scalar_lea.vmem %s1886_s3, %s226_s22 }
  0x11   : > { %s1741_s29 = scalar_lea.vmem %s1885_s2, %s1408_s23 }
  0x14   : > { %v245_v0 = vld [vmem:[%s1884_s1] sm:$0xff]   ;;  %v247_v1 = vld [vmem:[%s1884_s1 + $0x8] sm:$0xff]   ;;  %v249_v2 = vld [vmem:[%s1884_s1 + $0x10] sm:$0xff]  }
  0x15   : > { %261 = vst [vmem:[#allocation2] sm:$0xff] %v245_v0   ;;  %v251_v3 = vld [vmem:[%s1884_s1 + $0x18] sm:$0xff]   ;;  %v253_v4 = vld [vmem:[%s1884_s1 + $0x20] sm:$0xff]   ;;  %v255_v5 = vld [vmem:[%s1884_s1 + $0x28] sm:$0xff]  }
  0x16   : > { %263 = vst [vmem:[#allocation2 + $0x8] sm:$0xff] %v247_v1   ;;  %v257_v6 = vld [vmem:[%s1884_s1 + $0x30] sm:$0xff]   ;;  %v259_v7 = vld [vmem:[%s1884_s1 + $0x38] sm:$0xff]  }
  0x17   : > { %265 = vst [vmem:[#allocation2 + $0x10] sm:$0xff] %v249_v2  }
  0x18   : > { %267 = vst [vmem:[#allocation2 + $0x18] sm:$0xff] %v251_v3  }
  0x19   : > { %269 = vst [vmem:[#allocation2 + $0x20] sm:$0xff] %v253_v4  }
  0x1a   : > { %271 = vst [vmem:[#allocation2 + $0x28] sm:$0xff] %v255_v5  }
  0x1b   : > { %273 = vst [vmem:[#allocation2 + $0x30] sm:$0xff] %v257_v6  }
  0x1c   : > { %275 = vst [vmem:[#allocation2 + $0x38] sm:$0xff] %v259_v7  }
  0x1d PF: > { %278 = sbr.rel (!%p233_p6) target bundleno = 220 (0xdc), region = 44  ;;  %v1426_v8 = vld [vmem:[%s1741_s29 + $0x38] sm:$0xff] (%p233_p6)  ;;  %v1425_v9 = vld [vmem:[%s1741_s29 + $0x30] sm:$0xff] (%p233_p6)  ;;  %v1424_v10 = vld [vmem:[%s1741_s29 + $0x28] sm:$0xff] (%p233_p6) }
  0x1e   : > { %407 = vmatpush.bf16.msra.mxu0 (%p233_p6), %v1426_v8  ;;  %1545 = vmatpush.bf16.msra.mxu1 (%p233_p6), %v1426_v8  ;;  %v1423_v11 = vld [vmem:[%s1741_s29 + $0x20] sm:$0xff] (%p233_p6)  ;;  %v1422_v12 = vld [vmem:[%s1741_s29 + $0x18] sm:$0xff] (%p233_p6)  ;;  %v1421_v13 = vld [vmem:[%s1741_s29 + $0x10] sm:$0xff] (%p233_p6) }
  0x1f   : > { %1546 = vmatpush.bf16.msra.mxu2 (%p233_p6), %v1426_v8  ;;  %1547 = vmatpush.bf16.msra.mxu3 (%p233_p6), %v1426_v8  ;;  %v1420_v14 = vld [vmem:[%s1741_s29 + $0x8] sm:$0xff] (%p233_p6)  ;;  %v1419_v15 = vld [vmem:[%s1741_s29] sm:$0xff] (%p233_p6)  ;;  %v1413_v17 = vld [vmem:[#allocation2 + $0x10] sm:$0xff] (%p233_p6) }
  0x20   : > { %v1411_v16 = vld [vmem:[#allocation2] sm:$0xff] (%p233_p6)  ;;  %v1412_v20 = vld [vmem:[#allocation2 + $0x8] sm:$0xff] (%p233_p6)  ;;  %v1414_v21 = vld [vmem:[#allocation2 + $0x18] sm:$0xff] (%p233_p6) }
  0x21   : > { %v1415_v18 = vld [vmem:[#allocation2 + $0x20] sm:$0xff] (%p233_p6)  ;;  %v1416_v22 = vld [vmem:[#allocation2 + $0x28] sm:$0xff] (%p233_p6) }
  0x22   : > { %408 = vmatpush.bf16.msra.mxu0 %v1425_v9  ;;  %1548 = vmatpush.bf16.msra.mxu1 %v1425_v9  ;;  %v1417_v19 = vld [vmem:[#allocation2 + $0x30] sm:$0xff] }
  0x23   : > { %1549 = vmatpush.bf16.msra.mxu2 %v1425_v9  ;;  %1550 = vmatpush.bf16.msra.mxu3 %v1425_v9  ;;  %v1418_v23 = vld [vmem:[#allocation2 + $0x38] sm:$0xff] }
  0x26   : > { %409 = vmatpush.bf16.msra.mxu0 %v1424_v10  ;;  %1551 = vmatpush.bf16.msra.mxu1 %v1424_v10 }
  0x27   : > { %1552 = vmatpush.bf16.msra.mxu2 %v1424_v10  ;;  %1553 = vmatpush.bf16.msra.mxu3 %v1424_v10 }
  0x2a   : > { %410 = vmatpush.bf16.msra.mxu0 %v1423_v11  ;;  %1554 = vmatpush.bf16.msra.mxu1 %v1423_v11 }
  0x2b   : > { %1555 = vmatpush.bf16.msra.mxu2 %v1423_v11  ;;  %1556 = vmatpush.bf16.msra.mxu3 %v1423_v11 }
  0x2e   : > { %411 = vmatpush.bf16.msra.mxu0 %v1422_v12  ;;  %1557 = vmatpush.bf16.msra.mxu1 %v1422_v12 }
  0x2f   : > { %1558 = vmatpush.bf16.msra.mxu2 %v1422_v12  ;;  %1559 = vmatpush.bf16.msra.mxu3 %v1422_v12 }
  0x32   : > { %412 = vmatpush.bf16.msra.mxu0 %v1421_v13  ;;  %1560 = vmatpush.bf16.msra.mxu1 %v1421_v13 }
  0x33   : > { %1561 = vmatpush.bf16.msra.mxu2 %v1421_v13  ;;  %1562 = vmatpush.bf16.msra.mxu3 %v1421_v13 }
  0x36   : > { %413 = vmatpush.bf16.msra.mxu0 %v1420_v14  ;;  %1563 = vmatpush.bf16.msra.mxu1 %v1420_v14 }
  0x37   : > { %1564 = vmatpush.bf16.msra.mxu2 %v1420_v14  ;;  %1565 = vmatpush.bf16.msra.mxu3 %v1420_v14 }
  0x3a   : > { %414 = vmatpush.bf16.msra.mxu0 %v1419_v15  ;;  %1566 = vmatpush.bf16.msra.mxu1 %v1419_v15 }
  0x3b   : > { %1567 = vmatpush.bf16.msra.mxu2 %v1419_v15  ;;  %1568 = vmatpush.bf16.msra.mxu3 %v1419_v15 }
  0x3d   : > { %415 = vmatmul.bf16.vlgmr.msra.gmra.mxu0 %v1411_v16  ;;  %425 = vmatmul.bf16.vlgmr.msra.gmra.mxu1 %v1413_v17 }
  0x3e   : > { %435 = vmatmul.bf16.vlgmr.msra.gmra.mxu2 %v1415_v18  ;;  %445 = vmatmul.bf16.vlgmr.msra.gmra.mxu3 %v1417_v19 }
  0x4d   : > { %420 = vmatmul.bf16.gmra.mxu0 %v1412_v20  ;;  %430 = vmatmul.bf16.gmra.mxu1 %v1414_v21 }
  0x4e   : > { %440 = vmatmul.bf16.gmra.mxu2 %v1416_v22  ;;  %450 = vmatmul.bf16.gmra.mxu3 %v1418_v23 }
  0xba   : > { %v416_v24 = vpop.f32.mrf.mxu0  ;;  %v426_v25 = vpop.f32.mrf.mxu1 }
  0xbb   : > { %456 = vst [vmem:[#allocation4 + $0x30] sm:$0xff] %v416_v24 }
  0xbc   : > { %460 = vst [vmem:[#allocation4 + $0x50] sm:$0xff] %v426_v25 }
  0xc1   : > { %v436_v26 = vpop.f32.mrf.mxu2  ;;  %v446_v27 = vpop.f32.mrf.mxu3 }
  0xc2   : > { %464 = vst [vmem:[#allocation4 + $0x40] sm:$0xff] %v436_v26  ;;  %v418_v28 = vpop.f32.mrf.mxu0  ;;  %v428_v29 = vpop.f32.mrf.mxu1 }
  0xc3   : > { %468 = vst [vmem:[#allocation4 + $0x60] sm:$0xff] %v446_v27 }
  0xc4   : > { %457 = vst [vmem:[#allocation4] sm:$0xff] %v418_v28 }
  0xc5   : > { %461 = vst [vmem:[#allocation4 + $0x68] sm:$0xff] %v428_v29 }
  0xc9   : > { %v438_v30 = vpop.f32.mrf.mxu2  ;;  %v448_v31 = vpop.f32.mrf.mxu3 }
  0xca   : > { %465 = vst [vmem:[#allocation4 + $0x20] sm:$0xff] %v438_v30  ;;  %v421_v32 = vpop.f32.mrf.mxu0  ;;  %v431_v33 = vpop.f32.mrf.mxu1 }
  0xcb   : > { %469 = vst [vmem:[#allocation4 + $0x70] sm:$0xff] %v448_v31 }
  0xcc   : > { %458 = vst [vmem:[#allocation4 + $0x58] sm:$0xff] %v421_v32 }
  0xcd   : > { %462 = vst [vmem:[#allocation4 + $0x8] sm:$0xff] %v431_v33 }
  0xd1   : > { %v441_v34 = vpop.f32.mrf.mxu2  ;;  %v451_v35 = vpop.f32.mrf.mxu3 }
  0xd2   : > { %466 = vst [vmem:[#allocation4 + $0x10] sm:$0xff] %v441_v34  ;;  %v423_v36 = vpop.f32.mrf.mxu0  ;;  %v433_v37 = vpop.f32.mrf.mxu1 }
  0xd3   : > { %470 = vst [vmem:[#allocation4 + $0x78] sm:$0xff] %v451_v35 }
  0xd4   : > { %459 = vst [vmem:[#allocation4 + $0x18] sm:$0xff] %v423_v36 }
  0xd5   : > { %463 = vst [vmem:[#allocation4 + $0x48] sm:$0xff] %v433_v37 }
  0xd9   : > { %v443_v38 = vpop.f32.mrf.mxu2  ;;  %v453_v39 = vpop.f32.mrf.mxu3 }
  0xda   : > { %467 = vst [vmem:[#allocation4 + $0x38] sm:$0xff] %v443_v38 }
  0xdb   : > { %471 = vst [vmem:[#allocation4 + $0x28] sm:$0xff] %v453_v39 }
  0xdc PF: > { %v1441_v41 = vld [vmem:[#allocation2 + $0x30] sm:$0xff]  ;;  %v1440_v42 = vld [vmem:[#allocation2 + $0x28] sm:$0xff]  ;;  %v1439_v43 = vld [vmem:[#allocation2 + $0x20] sm:$0xff]  ;;  %s1357_s7 = sshll.u32 %s1649_s15, 6 }
  0xdd   : > { %v1442_v40 = vld [vmem:[#allocation2 + $0x38] sm:$0xff]  ;;  %v1437_v45 = vld [vmem:[#allocation2 + $0x10] sm:$0xff]  ;;  %v1436_v46 = vld [vmem:[#allocation2 + $0x8] sm:$0xff]  ;;  %s1791_s12 = scalar_lea.vmem %s1741_s29, %s1357_s7 }
  0xde   : > { %605 = vmatpush.bf16.msra.mxu0 %v1442_v40  ;;  %1569 = vmatpush.bf16.msra.mxu2 %v1442_v40  ;;  %v1438_v44 = vld [vmem:[#allocation2 + $0x18] sm:$0xff]  ;;  %v1435_v47 = vld [vmem:[#allocation2] sm:$0xff]  ;;  %v1428_v50 = vld [vmem:[%s1883_s0 + $0x8] sm:$0xff] }
  0xdf   : > { %v1427_v48 = vld [vmem:[%s1883_s0] sm:$0xff]  ;;  %v1432_v51 = vld [vmem:[%s1883_s0 + $0x28] sm:$0xff]  ;;  %v1450_v52 = vld [vmem:[%s1791_s12 + $0x78] sm:$0xff] }
  0xe0   : > { %v1431_v49 = vld [vmem:[%s1883_s0 + $0x20] sm:$0xff]  ;;  %892 = vmatpush.bf16.msra.mxu1 %v1450_v52  ;;  %v1449_v53 = vld [vmem:[%s1791_s12 + $0x70] sm:$0xff]  ;;  %1577 = vmatpush.bf16.msra.mxu3 %v1450_v52  ;;  %v1448_v54 = vld [vmem:[%s1791_s12 + $0x68] sm:$0xff] }
  0xe1   : > { %v1447_v55 = vld [vmem:[%s1791_s12 + $0x60] sm:$0xff]  ;;  %v1429_v56 = vld [vmem:[%s1883_s0 + $0x10] sm:$0xff]  ;;  %v1430_v58 = vld [vmem:[%s1883_s0 + $0x18] sm:$0xff] }
  0xe2   : > { %606 = vmatpush.bf16.msra.mxu0 %v1441_v41  ;;  %1570 = vmatpush.bf16.msra.mxu2 %v1441_v41  ;;  %v1433_v57 = vld [vmem:[%s1883_s0 + $0x30] sm:$0xff]  ;;  %v1434_v59 = vld [vmem:[%s1883_s0 + $0x38] sm:$0xff]  ;;  %v1444_v62 = vld [vmem:[%s1791_s12 + $0x48] sm:$0xff] }
  0xe3   : > { %v1446_v60 = vld [vmem:[%s1791_s12 + $0x58] sm:$0xff]  ;;  %v1445_v61 = vld [vmem:[%s1791_s12 + $0x50] sm:$0xff]  ;;  %v1443_v63 = vld [vmem:[%s1791_s12 + $0x40] sm:$0xff] }
  0xe4   : > { %893 = vmatpush.bf16.msra.mxu1 %v1449_v53  ;;  %1578 = vmatpush.bf16.msra.mxu3 %v1449_v53 }
  0xe6   : > { %607 = vmatpush.bf16.msra.mxu0 %v1440_v42  ;;  %1571 = vmatpush.bf16.msra.mxu2 %v1440_v42 }
  0xe8   : > { %894 = vmatpush.bf16.msra.mxu1 %v1448_v54  ;;  %1579 = vmatpush.bf16.msra.mxu3 %v1448_v54 }
  0xea   : > { %608 = vmatpush.bf16.msra.mxu0 %v1439_v43  ;;  %1572 = vmatpush.bf16.msra.mxu2 %v1439_v43 }
  0xec   : > { %895 = vmatpush.bf16.msra.mxu1 %v1447_v55  ;;  %1580 = vmatpush.bf16.msra.mxu3 %v1447_v55 }
  0xee   : > { %609 = vmatpush.bf16.msra.mxu0 %v1438_v44  ;;  %1573 = vmatpush.bf16.msra.mxu2 %v1438_v44 }
  0xf0   : > { %896 = vmatpush.bf16.msra.mxu1 %v1446_v60  ;;  %1581 = vmatpush.bf16.msra.mxu3 %v1446_v60 }
  0xf2   : > { %610 = vmatpush.bf16.msra.mxu0 %v1437_v45  ;;  %1574 = vmatpush.bf16.msra.mxu2 %v1437_v45 }
  0xf4   : > { %897 = vmatpush.bf16.msra.mxu1 %v1445_v61  ;;  %1582 = vmatpush.bf16.msra.mxu3 %v1445_v61 }
  0xf6   : > { %611 = vmatpush.bf16.msra.mxu0 %v1436_v46  ;;  %1575 = vmatpush.bf16.msra.mxu2 %v1436_v46 }
  0xf8   : > { %898 = vmatpush.bf16.msra.mxu1 %v1444_v62  ;;  %1583 = vmatpush.bf16.msra.mxu3 %v1444_v62 }
  0xfa   : > { %612 = vmatpush.bf16.msra.mxu0 %v1435_v47  ;;  %1576 = vmatpush.bf16.msra.mxu2 %v1435_v47 }
  0xfc   : > { %899 = vmatpush.bf16.msra.mxu1 %v1443_v63  ;;  %1584 = vmatpush.bf16.msra.mxu3 %v1443_v63 }
  0xfd   : > { %613 = vmatmul.bf16.vlgmr.msra.gmra.mxu0 %v1427_v48  ;;  %633 = vmatmul.bf16.vlgmr.msra.gmra.mxu2 %v1431_v49 }
 0x10d   : > { %618 = vmatmul.bf16.gmra.mxu0 %v1428_v50  ;;  %638 = vmatmul.bf16.gmra.mxu2 %v1432_v51 }
 0x11d   : > { %623 = vmatmul.bf16.gmra.mxu0 %v1429_v56  ;;  %643 = vmatmul.bf16.gmra.mxu2 %v1433_v57 }
 0x12d   : > { %628 = vmatmul.bf16.gmra.mxu0 %v1430_v58  ;;  %648 = vmatmul.bf16.gmra.mxu2 %v1434_v59 }
 0x17a   : > { %v614_v0 = vpop.f32.mrf.mxu0 }
 0x17b   : > { %v744_v1 = vpack.c.bf16 %v614_v0, %v614_v0 }
 0x17d   : > { %v812_v4 = vunpack.c.l.b16 %v744_v1 }
 0x180   : > { %v634_v2 = vpop.f32.mrf.mxu2 }
 0x181   : > { %v752_v8 = vpack.c.bf16 %v634_v2, %v634_v2 }
 0x182   : > { %v616_v3 = vpop.f32.mrf.mxu0 }
 0x183   : > { %v745_v5 = vpack.c.bf16 %v616_v3, %v616_v3  ;;  %v1454_v6 = vpack.c.bf16 %v616_v3, %v614_v0  ;;  %v820_v14 = vunpack.c.l.b16 %v752_v8  ;;  %v760_v0 = vld [vmem:[#allocation4 + $0x30] sm:$0xff]  ;;  %v761_v3 = vld [vmem:[#allocation4] sm:$0xff] }
 0x185   : > { %v813_v7 = vunpack.c.l.b16 %v745_v5  ;;  %1455 = vst [vmem:[#allocation2] sm:$0xff] %v1454_v6   ;;  %v768_v6 = vld [vmem:[#allocation4 + $0x40] sm:$0xff] }
 0x187   : > { %v828_v9 = vpack.c.b16 %v813_v7, %v812_v4 }
 0x188   : > { %v636_v10 = vpop.f32.mrf.mxu2 }
 0x189   : > { %v753_v11 = vpack.c.bf16 %v636_v10, %v636_v10  ;;  %v1474_v12 = vpack.c.bf16 %v636_v10, %v634_v2  ;;  %900 = vmatmul.bf16.vlgmr.msra.gmra.mxu1 %v828_v9  ;;  %v762_v9 = vld [vmem:[#allocation4 + $0x58] sm:$0xff] }
 0x18a   : > { %v619_v13 = vpop.f32.mrf.mxu0 }
 0x18b   : > { %v821_v15 = vunpack.c.l.b16 %v753_v11  ;;  %1534 = vst [vmem:[#allocation2 + $0x20] sm:$0xff] %v1474_v12   ;;  %v746_v17 = vpack.c.bf16 %v619_v13, %v619_v13  ;;  %v769_v12 = vld [vmem:[#allocation4 + $0x20] sm:$0xff] }
 0x18d   : > { %v832_v16 = vpack.c.b16 %v821_v15, %v820_v14  ;;  %v814_v20 = vunpack.c.l.b16 %v746_v17  ;;  %v763_v15 = vld [vmem:[#allocation4 + $0x18] sm:$0xff] }
 0x18f   : > { %920 = vmatmul.bf16.vlgmr.msra.gmra.mxu3 %v832_v16 }
 0x190   : > { %v639_v18 = vpop.f32.mrf.mxu2 }
 0x191   : > { %v754_v24 = vpack.c.bf16 %v639_v18, %v639_v18 }
 0x192   : > { %v621_v19 = vpop.f32.mrf.mxu0 }
 0x193   : > { %v747_v21 = vpack.c.bf16 %v621_v19, %v621_v19  ;;  %v1459_v22 = vpack.c.bf16 %v621_v19, %v619_v13  ;;  %v822_v30 = vunpack.c.l.b16 %v754_v24  ;;  %v771_v24 = vld [vmem:[#allocation4 + $0x38] sm:$0xff] }
 0x195   : > { %v815_v23 = vunpack.c.l.b16 %v747_v21  ;;  %1531 = vst [vmem:[#allocation2 + $0x8] sm:$0xff] %v1459_v22   ;;  %v764_v21 = vld [vmem:[#allocation4 + $0x50] sm:$0xff] }
 0x197   : > { %v829_v25 = vpack.c.b16 %v815_v23, %v814_v20 }
 0x198   : > { %v641_v26 = vpop.f32.mrf.mxu2 }
 0x199   : > { %v755_v27 = vpack.c.bf16 %v641_v26, %v641_v26  ;;  %v1479_v28 = vpack.c.bf16 %v641_v26, %v639_v18  ;;  %905 = vmatmul.bf16.gmra.mxu1 %v829_v25  ;;  %v770_v18 = vld [vmem:[#allocation4 + $0x10] sm:$0xff] }
 0x19a   : > { %v624_v29 = vpop.f32.mrf.mxu0 }
 0x19b   : > { %v823_v31 = vunpack.c.l.b16 %v755_v27  ;;  %1535 = vst [vmem:[#allocation2 + $0x28] sm:$0xff] %v1479_v28   ;;  %v748_v33 = vpack.c.bf16 %v624_v29, %v624_v29  ;;  %v765_v27 = vld [vmem:[#allocation4 + $0x68] sm:$0xff] }
 0x19d   : > { %v833_v32 = vpack.c.b16 %v823_v31, %v822_v30  ;;  %v816_v36 = vunpack.c.l.b16 %v748_v33  ;;  %v772_v30 = vld [vmem:[#allocation4 + $0x60] sm:$0xff]  ;;  %v766_v33 = vld [vmem:[#allocation4 + $0x8] sm:$0xff] }
 0x19f   : > { %925 = vmatmul.bf16.gmra.mxu3 %v833_v32 }
 0x1a0   : > { %v644_v34 = vpop.f32.mrf.mxu2 }
 0x1a1   : > { %v756_v40 = vpack.c.bf16 %v644_v34, %v644_v34 }
 0x1a2   : > { %v626_v35 = vpop.f32.mrf.mxu0 }
 0x1a3   : > { %v749_v37 = vpack.c.bf16 %v626_v35, %v626_v35  ;;  %v1464_v38 = vpack.c.bf16 %v626_v35, %v624_v29  ;;  %v824_v46 = vunpack.c.l.b16 %v756_v40 }
 0x1a5   : > { %v817_v39 = vunpack.c.l.b16 %v749_v37  ;;  %1532 = vst [vmem:[#allocation2 + $0x10] sm:$0xff] %v1464_v38  }
 0x1a7   : > { %v830_v41 = vpack.c.b16 %v817_v39, %v816_v36  ;;  %v773_v36 = vld [vmem:[#allocation4 + $0x70] sm:$0xff]  ;;  %v767_v39 = vld [vmem:[#allocation4 + $0x48] sm:$0xff] }
 0x1a8   : > { %v646_v42 = vpop.f32.mrf.mxu2 }
 0x1a9   : > { %v757_v43 = vpack.c.bf16 %v646_v42, %v646_v42  ;;  %v1484_v44 = vpack.c.bf16 %v646_v42, %v644_v34  ;;  %910 = vmatmul.bf16.gmra.mxu1 %v830_v41  ;;  %v774_v42 = vld [vmem:[#allocation4 + $0x78] sm:$0xff] }
 0x1aa   : > { %v629_v45 = vpop.f32.mrf.mxu0 }
 0x1ab   : > { %v825_v47 = vunpack.c.l.b16 %v757_v43  ;;  %1536 = vst [vmem:[#allocation2 + $0x30] sm:$0xff] %v1484_v44   ;;  %v750_v49 = vpack.c.bf16 %v629_v45, %v629_v45 }
 0x1ad   : > { %v834_v48 = vpack.c.b16 %v825_v47, %v824_v46  ;;  %v818_v52 = vunpack.c.l.b16 %v750_v49 }
 0x1af   : > { %930 = vmatmul.bf16.gmra.mxu3 %v834_v48 }
 0x1b0   : > { %v649_v50 = vpop.f32.mrf.mxu2 }
 0x1b1   : > { %v758_v56 = vpack.c.bf16 %v649_v50, %v649_v50 }
 0x1b2   : > { %v631_v51 = vpop.f32.mrf.mxu0 }
 0x1b3   : > { %v751_v53 = vpack.c.bf16 %v631_v51, %v631_v51  ;;  %v1469_v54 = vpack.c.bf16 %v631_v51, %v629_v45  ;;  %v826_v61 = vunpack.c.l.b16 %v758_v56  ;;  %v775_v45 = vld [vmem:[#allocation4 + $0x28] sm:$0xff] }
 0x1b5   : > { %v819_v55 = vunpack.c.l.b16 %v751_v53  ;;  %1533 = vst [vmem:[#allocation2 + $0x18] sm:$0xff] %v1469_v54  }
 0x1b7   : > { %v831_v57 = vpack.c.b16 %v819_v55, %v818_v52 }
 0x1b8   : > { %v651_v58 = vpop.f32.mrf.mxu2 }
 0x1b9   : > { %v759_v59 = vpack.c.bf16 %v651_v58, %v651_v58  ;;  %v1489_v60 = vpack.c.bf16 %v651_v58, %v649_v50  ;;  %915 = vmatmul.bf16.gmra.mxu1 %v831_v57  ;;  %v1625_v50 = vld [vmem:[%s1736_s26] ss:$0 sm:$0xff] (%p237_p7) }
 0x1bb   : > { %v827_v62 = vunpack.c.l.b16 %v759_v59  ;;  %1537 = vst [vmem:[#allocation2 + $0x38] sm:$0xff] %v1489_v60  }
 0x1bd   : > { %v835_v63 = vpack.c.b16 %v827_v62, %v826_v61 }
 0x1bf   : > { %935 = vmatmul.bf16.gmra.mxu3 %v835_v63 }
 0x206   : > { %v901_v1 = vpop.f32.mrf.mxu1 }
 0x207   : > { %v941_v2 = vadd.f32 %v901_v1, %v760_v0 }
 0x209   : > { %957 = vst [vmem:[#allocation4 + $0x30] sm:$0xff] %v941_v2 }
 0x20e   : > { %v903_v4 = vpop.f32.mrf.mxu1 }
 0x20f   : > { %v942_v5 = vadd.f32 %v903_v4, %v761_v3 }
 0x210   : > { %v991_v48 = vld [vmem:[#allocation4 + $0x30] sm:$0xff] (%p237_p7) }
 0x211   : > { %958 = vst [vmem:[#allocation4] sm:$0xff] %v942_v5  ;;  %v1011_v56 = vadd.f32 (%p237_p7), %v1625_v50, %v991_v48 }
 0x212   : > { %v921_v7 = vpop.f32.mrf.mxu3 }
 0x213   : > { %v949_v8 = vadd.f32 %v921_v7, %v768_v6  ;;  %v1027_v3 = vmax.f32 (%p237_p7), %v1011_v56, 0.0 }
 0x215   : > { %965 = vst [vmem:[#allocation4 + $0x40] sm:$0xff] %v949_v8 }
 0x216   : > { %v906_v10 = vpop.f32.mrf.mxu1 }
 0x217   : > { %v943_v11 = vadd.f32 %v906_v10, %v762_v9 }
 0x218   : > { %v992_v49 = vld [vmem:[#allocation4] sm:$0xff] (%p237_p7) }
 0x219   : > { %959 = vst [vmem:[#allocation4 + $0x58] sm:$0xff] %v943_v11  ;;  %v1012_v57 = vadd.f32 (%p237_p7), %v1625_v50, %v992_v49 }
 0x21a   : > { %v923_v13 = vpop.f32.mrf.mxu3 }
 0x21b   : > { %v950_v14 = vadd.f32 %v923_v13, %v769_v12  ;;  %v1028_v4 = vmax.f32 (%p237_p7), %v1012_v57, 0.0 }
 0x21c   : > { %v999_v1 = vld [vmem:[#allocation4 + $0x40] sm:$0xff] (%p237_p7) }
 0x21d   : > { %966 = vst [vmem:[#allocation4 + $0x20] sm:$0xff] %v950_v14 }
 0x21e   : > { %v908_v16 = vpop.f32.mrf.mxu1 }
 0x21f   : > { %v944_v17 = vadd.f32 %v908_v16, %v763_v15  ;;  %v1494_v15 = vpack.c.bf16 (%p237_p7), %v1028_v4, %v1027_v3 }
 0x220   : > { %v993_v51 = vld [vmem:[#allocation4 + $0x58] sm:$0xff] (%p237_p7) }
 0x221   : > { %960 = vst [vmem:[#allocation4 + $0x18] sm:$0xff] %v944_v17  ;;  %v1013_v58 = vadd.f32 (%p237_p7), %v1625_v50, %v993_v51  ;;  %v1019_v17 = vadd.f32 (%p237_p7), %v1625_v50, %v999_v1 }
 0x222   : > { %v926_v19 = vpop.f32.mrf.mxu3  ;;  %1495 = vst [vmem:[#allocation2] sm:$0xff] (%p237_p7), %v1494_v15  }
 0x223   : > { %v951_v20 = vadd.f32 %v926_v19, %v770_v18  ;;  %v1029_v5 = vmax.f32 (%p237_p7), %v1013_v58, 0.0 }
 0x224   : > { %v1000_v2 = vld [vmem:[#allocation4 + $0x20] sm:$0xff] (%p237_p7) }
 0x225   : > { %967 = vst [vmem:[#allocation4 + $0x10] sm:$0xff] %v951_v20  ;;  %v1020_v18 = vadd.f32 (%p237_p7), %v1625_v50, %v1000_v2 }
 0x226   : > { %v911_v22 = vpop.f32.mrf.mxu1 }
 0x227   : > { %v945_v23 = vadd.f32 %v911_v22, %v764_v21 }
 0x228   : > { %v994_v52 = vld [vmem:[#allocation4 + $0x18] sm:$0xff] (%p237_p7) }
 0x229   : > { %961 = vst [vmem:[#allocation4 + $0x50] sm:$0xff] %v945_v23  ;;  %v1014_v59 = vadd.f32 (%p237_p7), %v1625_v50, %v994_v52 }
 0x22a   : > { %v928_v25 = vpop.f32.mrf.mxu3 }
 0x22b   : > { %v952_v26 = vadd.f32 %v928_v25, %v771_v24  ;;  %v1030_v6 = vmax.f32 (%p237_p7), %v1014_v59, 0.0  ;;  %v1035_v25 = vmax.f32 (%p237_p7), %v1019_v17, 0.0 }
 0x22c   : > { %v1001_v7 = vld [vmem:[#allocation4 + $0x10] sm:$0xff] (%p237_p7) }
 0x22d   : > { %968 = vst [vmem:[#allocation4 + $0x38] sm:$0xff] %v952_v26  ;;  %v1499_v16 = vpack.c.bf16 (%p237_p7), %v1030_v6, %v1029_v5  ;;  %v1021_v23 = vadd.f32 (%p237_p7), %v1625_v50, %v1001_v7  ;;  %v1036_v26 = vmax.f32 (%p237_p7), %v1020_v18, 0.0 }
 0x22e   : > { %v913_v28 = vpop.f32.mrf.mxu1 }
 0x22f   : > { %v946_v29 = vadd.f32 %v913_v28, %v765_v27  ;;  %1538 = vst [vmem:[#allocation2 + $0x8] sm:$0xff] (%p237_p7), %v1499_v16  }
 0x230   : > { %v995_v53 = vld [vmem:[#allocation4 + $0x50] sm:$0xff] (%p237_p7) }
 0x231   : > { %962 = vst [vmem:[#allocation4 + $0x68] sm:$0xff] %v946_v29  ;;  %v1015_v61 = vadd.f32 (%p237_p7), %v1625_v50, %v995_v53  ;;  %v1037_v29 = vmax.f32 (%p237_p7), %v1021_v23, 0.0 }
 0x232   : > { %v931_v31 = vpop.f32.mrf.mxu3 }
 0x233   : > { %v953_v32 = vadd.f32 %v931_v31, %v772_v30  ;;  %v1031_v9 = vmax.f32 (%p237_p7), %v1015_v61, 0.0 }
 0x234   : > { %v1002_v8 = vld [vmem:[#allocation4 + $0x38] sm:$0xff] (%p237_p7) }
 0x235   : > { %969 = vst [vmem:[#allocation4 + $0x60] sm:$0xff] %v953_v32  ;;  %v1022_v24 = vadd.f32 (%p237_p7), %v1625_v50, %v1002_v8 }
 0x236   : > { %v916_v34 = vpop.f32.mrf.mxu1 }
 0x237   : > { %v947_v35 = vadd.f32 %v916_v34, %v766_v33  ;;  %v1038_v30 = vmax.f32 (%p237_p7), %v1022_v24, 0.0  ;;  %v1514_v33 = vpack.c.bf16 (%p237_p7), %v1036_v26, %v1035_v25 }
 0x238   : > { %v996_v54 = vld [vmem:[#allocation4 + $0x68] sm:$0xff] (%p237_p7) }
 0x239   : > { %963 = vst [vmem:[#allocation4 + $0x8] sm:$0xff] %v947_v35  ;;  %v1016_v62 = vadd.f32 (%p237_p7), %v1625_v50, %v996_v54 }
 0x23a   : > { %v933_v37 = vpop.f32.mrf.mxu3  ;;  %1541 = vst [vmem:[#allocation2 + $0x20] sm:$0xff] (%p237_p7), %v1514_v33  }
 0x23b   : > { %v954_v38 = vadd.f32 %v933_v37, %v773_v36  ;;  %v1032_v10 = vmax.f32 (%p237_p7), %v1016_v62, 0.0  ;;  %v1519_v36 = vpack.c.bf16 (%p237_p7), %v1038_v30, %v1037_v29 }
 0x23c   : > { %v1003_v13 = vld [vmem:[#allocation4 + $0x60] sm:$0xff] (%p237_p7) }
 0x23d   : > { %970 = vst [vmem:[#allocation4 + $0x70] sm:$0xff] %v954_v38  ;;  %v1504_v21 = vpack.c.bf16 (%p237_p7), %v1032_v10, %v1031_v9  ;;  %v1023_v27 = vadd.f32 (%p237_p7), %v1625_v50, %v1003_v13 }
 0x23e   : > { %v918_v40 = vpop.f32.mrf.mxu1  ;;  %1542 = vst [vmem:[#allocation2 + $0x28] sm:$0xff] (%p237_p7), %v1519_v36  }
 0x23f   : > { %v948_v41 = vadd.f32 %v918_v40, %v767_v39  ;;  %1539 = vst [vmem:[#allocation2 + $0x10] sm:$0xff] (%p237_p7), %v1504_v21   ;;  %v1039_v34 = vmax.f32 (%p237_p7), %v1023_v27, 0.0 }
 0x240   : > { %v997_v55 = vld [vmem:[#allocation4 + $0x8] sm:$0xff] (%p237_p7) }
 0x241   : > { %964 = vst [vmem:[#allocation4 + $0x48] sm:$0xff] %v948_v41  ;;  %v1017_v63 = vadd.f32 (%p237_p7), %v1625_v50, %v997_v55 }
 0x242   : > { %v936_v43 = vpop.f32.mrf.mxu3 }
 0x243   : > { %v955_v44 = vadd.f32 %v936_v43, %v774_v42  ;;  %v1033_v11 = vmax.f32 (%p237_p7), %v1017_v63, 0.0 }
 0x244   : > { %v1004_v14 = vld [vmem:[#allocation4 + $0x70] sm:$0xff] (%p237_p7) }
 0x245   : > { %971 = vst [vmem:[#allocation4 + $0x78] sm:$0xff] %v955_v44  ;;  %v1024_v28 = vadd.f32 (%p237_p7), %v1625_v50, %v1004_v14 }
 0x247   : > { %v1040_v35 = vmax.f32 (%p237_p7), %v1024_v28, 0.0 }
 0x248   : > { %v998_v60 = vld [vmem:[#allocation4 + $0x48] sm:$0xff] (%p237_p7) }
 0x249   : > { %990 = sbr.rel (!%p237_p7) target bundleno = 604 (0x25c), region = 60  ;;  %v1018_v0 = vadd.f32 (%p237_p7), %v1625_v50, %v998_v60  ;;  %v1524_v39 = vpack.c.bf16 (%p237_p7), %v1040_v35, %v1039_v34 }
 0x24a   : > { %v938_v46 = vpop.f32.mrf.mxu3 }
 0x24b   : > { %v956_v47 = vadd.f32 %v938_v46, %v775_v45  ;;  %v1034_v12 = vmax.f32 (%p237_p7), %v1018_v0, 0.0  ;;  %1543 = vst [vmem:[#allocation2 + $0x30] sm:$0xff] (%p237_p7), %v1524_v39  }
 0x24c   : > { %v1005_v19 = vld [vmem:[#allocation4 + $0x78] sm:$0xff] (%p237_p7) }
 0x24d   : > { %972 = vst [vmem:[#allocation4 + $0x28] sm:$0xff] %v956_v47  ;;  %v1509_v22 = vpack.c.bf16 (%p237_p7), %v1034_v12, %v1033_v11  ;;  %v1025_v31 = vadd.f32 (%p237_p7), %v1625_v50, %v1005_v19 }
 0x24f   : > { %1540 = vst [vmem:[#allocation2 + $0x18] sm:$0xff] %v1509_v22   ;;  %v1041_v37 = vmax.f32 %v1025_v31, 0.0 }
 0x254   : > { %v1006_v20 = vld [vmem:[#allocation4 + $0x28] sm:$0xff] }
 0x255   : > { %v1026_v32 = vadd.f32 %v1625_v50, %v1006_v20 }
 0x257   : > { %v1042_v38 = vmax.f32 %v1026_v32, 0.0 }
 0x259   : > { %v1529_v40 = vpack.c.bf16 %v1042_v38, %v1041_v37 }
 0x25b   : > { %1544 = vst [vmem:[#allocation2 + $0x38] sm:$0xff] %v1529_v40  }
 0x25c PF: > { %p1075_p10 = scmp.eq.s32.totalorder %s1653_s16, 1 }
 0x25e   : > { %p1076_p11 = pnand %p1075_p10, %p237_p7 }
 0x260   : > { %1079 = sbr.rel (%p1076_p11) target bundleno = 634 (0x27a), region = 64 }
 0x265   : > { %v1080_v41 = vld [vmem:[#allocation4 + $0x30] sm:$0xff]  ;;  %v1626_v42 = vld [vmem:[%s1736_s26] ss:$0 sm:$0xff]  ;;  %v1082_v44 = vld [vmem:[#allocation4 + $0x58] sm:$0xff] }
 0x266   : > { %v1081_v43 = vld [vmem:[#allocation4] sm:$0xff]  ;;  %v1083_v45 = vld [vmem:[#allocation4 + $0x18] sm:$0xff]  ;;  %v1100_v46 = vadd.f32 %v1626_v42, %v1080_v41  ;;  %v1102_v48 = vadd.f32 %v1626_v42, %v1082_v44  ;;  %v1084_v50 = vld [vmem:[#allocation4 + $0x50] sm:$0xff] }
 0x267   : > { %v1101_v47 = vadd.f32 %v1626_v42, %v1081_v43  ;;  %v1103_v49 = vadd.f32 %v1626_v42, %v1083_v45  ;;  %v1085_v51 = vld [vmem:[#allocation4 + $0x68] sm:$0xff]  ;;  %v1104_v53 = vadd.f32 %v1626_v42, %v1084_v50  ;;  %v1088_v56 = vld [vmem:[#allocation4 + $0x40] sm:$0xff]  ;;  %v1090_v0 = vld [vmem:[#allocation4 + $0x10] sm:$0xff] }
 0x268   : > { %v1086_v52 = vld [vmem:[#allocation4 + $0x8] sm:$0xff]  ;;  %v1105_v54 = vadd.f32 %v1626_v42, %v1085_v51  ;;  %v1116_v57 = vmax.f32 %v1100_v46, 0.0  ;;  %v1118_v59 = vmax.f32 %v1102_v48, 0.0  ;;  %v1089_v61 = vld [vmem:[#allocation4 + $0x20] sm:$0xff]  ;;  %v1108_v2 = vadd.f32 %v1626_v42, %v1088_v56  ;;  %v1091_v3 = vld [vmem:[#allocation4 + $0x38] sm:$0xff] }
 0x269   : > { %v1087_v55 = vld [vmem:[#allocation4 + $0x48] sm:$0xff]  ;;  %v1117_v58 = vmax.f32 %v1101_v47, 0.0  ;;  %v1106_v60 = vadd.f32 %v1626_v42, %v1086_v52  ;;  %v1119_v62 = vmax.f32 %v1103_v49, 0.0  ;;  %v1120_v1 = vmax.f32 %v1104_v53, 0.0  ;;  %v1092_v6 = vld [vmem:[#allocation4 + $0x60] sm:$0xff]  ;;  %v1093_v9 = vld [vmem:[#allocation4 + $0x70] sm:$0xff] }
 0x26a   : > { %v1107_v63 = vadd.f32 %v1626_v42, %v1087_v55  ;;  %1132 = vst [vmem:[%s1887_s4] sm:$0xff] %v1116_v57  ;;  %v1121_v4 = vmax.f32 %v1105_v54, 0.0  ;;  %v1109_v5 = vadd.f32 %v1626_v42, %v1089_v61  ;;  %v1110_v8 = vadd.f32 %v1626_v42, %v1090_v0  ;;  %v1094_v12 = vld [vmem:[#allocation4 + $0x78] sm:$0xff]  ;;  %v1095_v15 = vld [vmem:[#allocation4 + $0x28] sm:$0xff] }
 0x26b   : > { %1133 = vst [vmem:[%s1887_s4 + $0x8] sm:$0xff] %v1117_v58  ;;  %v1122_v7 = vmax.f32 %v1106_v60, 0.0  ;;  %v1111_v11 = vadd.f32 %v1626_v42, %v1091_v3  ;;  %v1124_v13 = vmax.f32 %v1108_v2, 0.0  ;;  %v1112_v14 = vadd.f32 %v1626_v42, %v1092_v6 }
 0x26c   : > { %1134 = vst [vmem:[%s1887_s4 + $0x10] sm:$0xff] %v1118_v59  ;;  %v1123_v10 = vmax.f32 %v1107_v63, 0.0  ;;  %v1125_v16 = vmax.f32 %v1109_v5, 0.0  ;;  %v1113_v17 = vadd.f32 %v1626_v42, %v1093_v9  ;;  %v1126_v18 = vmax.f32 %v1110_v8, 0.0 }
 0x26d   : > { %1135 = vst [vmem:[%s1887_s4 + $0x18] sm:$0xff] %v1119_v62  ;;  %v1114_v19 = vadd.f32 %v1626_v42, %v1094_v12  ;;  %v1127_v20 = vmax.f32 %v1111_v11, 0.0  ;;  %v1115_v21 = vadd.f32 %v1626_v42, %v1095_v15  ;;  %v1128_v22 = vmax.f32 %v1112_v14, 0.0 }
 0x26e   : > { %1136 = vst [vmem:[%s1887_s4 + $0x20] sm:$0xff] %v1120_v1  ;;  %v1129_v23 = vmax.f32 %v1113_v17, 0.0 }
 0x26f   : > { %1137 = vst [vmem:[%s1887_s4 + $0x28] sm:$0xff] %v1121_v4  ;;  %v1130_v24 = vmax.f32 %v1114_v19, 0.0  ;;  %v1131_v25 = vmax.f32 %v1115_v21, 0.0 }
 0x270   : > { %1138 = vst [vmem:[%s1887_s4 + $0x30] sm:$0xff] %v1122_v7 }
 0x271   : > { %1139 = vst [vmem:[%s1887_s4 + $0x38] sm:$0xff] %v1123_v10 }
 0x272   : > { %1140 = vst [vmem:[%s1887_s4 + $0x40] sm:$0xff] %v1124_v13 }
 0x273   : > { %1141 = vst [vmem:[%s1887_s4 + $0x48] sm:$0xff] %v1125_v16 }
 0x274   : > { %1142 = vst [vmem:[%s1887_s4 + $0x50] sm:$0xff] %v1126_v18 }
 0x275   : > { %1143 = vst [vmem:[%s1887_s4 + $0x58] sm:$0xff] %v1127_v20 }
 0x276   : > { %1144 = vst [vmem:[%s1887_s4 + $0x60] sm:$0xff] %v1128_v22 }
 0x277   : > { %1145 = vst [vmem:[%s1887_s4 + $0x68] sm:$0xff] %v1129_v23 }
 0x278   : > { %1146 = vst [vmem:[%s1887_s4 + $0x70] sm:$0xff] %v1130_v24 }
 0x279   : > { %1147 = vst [vmem:[%s1887_s4 + $0x78] sm:$0xff] %v1131_v25 }
 0x27a PF: > { %s14_s19 = sadd.s32 1, %s1665_s19   ;;  %s1888_s15 = smov %s1657_s17 }
 0x27b   : > { %p11_p12 = scmp.ge.s32.totalorder %s14_s19, 8   ;;  %s1889_s16 = smov %s1661_s18 }
 0x27c   : > { %s1890_s17 = smov %s1893_s20  ;;  %s1891_s18 = smov %s1897_s21 }
 0x27d   :  { %13 = sbr.rel (!%p11_p12) target bundleno = 3 (0x3), region = 98 }

</bundles_post_ra>
